<compile_context>
chip_gen: v7x
topology: tpu7x:2x2x1
jax: 0.10.0
libtpu: 0.0.40
codegen_flags: <defaults>
</compile_context>

<pallas_src>
import functools
import math

import jax
import jax.numpy as jnp
from jax import lax
from jax.experimental import pallas as pl
from jax.experimental.pallas import tpu as pltpu


def _round_up(x, m):
    return ((x + m - 1) // m) * m


# ---------------------------------------------------------------------------
# Positional embedding (pure JAX prep; depends only on seq_len, cached)
# ---------------------------------------------------------------------------
def _positional_features_exponential(positions, features, seq_len, min_half_life=3.0):
    max_range = math.log(seq_len) / math.log(2.0)
    half_life = 2.0 ** jnp.linspace(min_half_life, max_range, features)
    pos = jnp.abs(positions).astype(jnp.float32)[:, None]
    return jnp.exp(-math.log(2.0) / half_life[None, :] * pos)


def _positional_features_central_mask(positions, features, seq_len):
    center_widths = 2.0 ** jnp.arange(1, features + 1).astype(jnp.float32) - 1.0
    pos = jnp.abs(positions).astype(jnp.float32)[:, None]
    return (center_widths[None, :] > pos).astype(jnp.float32)


def _gamma_pdf(x, concentration, rate):
    log_unnormalized = jax.scipy.special.xlogy(concentration - 1.0, x) - rate * x
    log_normalization = (jax.scipy.special.gammaln(concentration)
                         - concentration * jnp.log(rate))
    return jnp.exp(log_unnormalized - log_normalization)


def _positional_features_gamma(positions, features, seq_len, eps=1e-8):
    stddev = seq_len / (2 * features)
    start_mean = seq_len / features
    mean = jnp.linspace(start_mean, seq_len, features)[None, :]
    concentration = (mean / stddev) ** 2
    rate = mean / stddev ** 2
    prob = _gamma_pdf(jnp.abs(positions.astype(jnp.float32))[:, None],
                      concentration, rate)
    prob = prob + eps
    return prob / jnp.amax(prob, axis=-1, keepdims=True)


@functools.lru_cache(maxsize=None)
def get_positional_embed(seq_len, feature_size):
    distances = jnp.arange(-seq_len + 1, seq_len)
    num_components = 6
    if feature_size % num_components != 0:
        raise ValueError("feature size must be divisible by 6")
    nb = feature_size // num_components
    emb = jnp.concatenate(
        [
            _positional_features_exponential(distances, nb, seq_len),
            _positional_features_central_mask(distances, nb, seq_len),
            _positional_features_gamma(distances, nb, seq_len),
        ],
        axis=-1,
    )
    sign = jnp.sign(distances).astype(emb.dtype)[:, None]
    return jnp.concatenate([emb, sign * emb], axis=-1)   # (2n-1, feature_size)


# ---------------------------------------------------------------------------
# Pallas kernels
# ---------------------------------------------------------------------------
def _rel_k_kernel(pos_ref, w_ref, rk_ref):
    # pos: (Wp, F)  w: (F, dk)  ->  rk: (Wp, dk)   (per head via grid)
    rk_ref[0] = jnp.dot(pos_ref[...], w_ref[0],
                        preferred_element_type=jnp.float32).astype(rk_ref.dtype)


def _qkv_proj_kernel(x_ref, w_ref, q_ref, k_ref, v_ref, *, dim_key, dim_value):
    # Fused q/k/v projection for one (head, batch, m-tile).
    # x: (tm, dim)  w: (dim, 2*dk + dv); scale already folded into q columns.
    y = jnp.dot(x_ref[0], w_ref[0], preferred_element_type=jnp.float32)
    q_ref[0, 0] = y[:, :dim_key].astype(q_ref.dtype)
    k_ref[0, 0] = y[:, dim_key:2 * dim_key].astype(k_ref.dtype)
    v_ref[0, 0] = y[:, 2 * dim_key:2 * dim_key + dim_value].astype(v_ref.dtype)


def _attention_kernel(q_ref, k_ref, v_ref, rk_ref, cb_ref, pb_ref, o_ref, *,
                      seq_len, rel_width, block_q):
    n = seq_len
    q = q_ref[0, 0]                    # (tq, dk)  — already scaled
    k = k_ref[0, 0]                    # (n, dk)
    v = v_ref[0, 0]                    # (n, dv)
    rk = rk_ref[0]                     # (Wp, dk)  Wp = round_up(2n, 128); row 0 is a zero pad
    cb = cb_ref[0]                     # (1, dk)
    pb = pb_ref[0]                     # (1, dk)

    dn = (((1,), (1,)), ((), ()))      # contract the last dims (A @ B^T)
    content = lax.dot_general(q + cb, k, dn,
                              preferred_element_type=jnp.float32)      # (tq, n)
    rel = lax.dot_general(q + pb, rk, dn,
                          preferred_element_type=jnp.float32)          # (tq, Wp)

    # relative_shift: for global row i, shifted[i, j] = rel[i, n - i + j]
    # (rk is pre-padded with one leading zero row so all rotate amounts are
    #  in [Wp - n, Wp - 1] and no wrapped garbage lands in columns < n).
    q0 = pl.program_id(2) * block_q
    shifted = pltpu.roll(rel, rel_width - n + q0, axis=1,
                         stride=1, stride_axis=0)
    logits = content + shifted[:, :n]                                   # (tq, n)

    m = jnp.max(logits, axis=-1, keepdims=True)
    p = jnp.exp(logits - m)
    l = jnp.sum(p, axis=-1, keepdims=True)
    inv = pl.reciprocal(l, approx=True)                                 # EUP
    out = jnp.dot(p.astype(v.dtype), v,
                  preferred_element_type=jnp.float32) * inv             # (tq, dv)
    o_ref[0, 0] = out.astype(o_ref.dtype)


def _out_proj_kernel(a_ref, w_ref, b_ref, o_ref, acc_ref):
    # y[b, m-tile, :] = sum_h attn_out[b, h, m-tile, :] @ w_out[h] + bias
    h = pl.program_id(2)

    @pl.when(h == 0)
    def _():
        acc_ref[...] = jnp.broadcast_to(b_ref[...].astype(jnp.float32),
                                        acc_ref.shape)

    acc_ref[...] += jnp.dot(a_ref[0, 0], w_ref[0],
                            preferred_element_type=jnp.float32)

    @pl.when(h == pl.num_programs(2) - 1)
    def _():
        o_ref[0] = acc_ref[...].astype(o_ref.dtype)


# ---------------------------------------------------------------------------
# Forward wrapper (mirrors Attention.forward, eval mode)
# ---------------------------------------------------------------------------
def enformer_attention(x, params, *, heads, dim_key, dim_value,
                       num_rel_pos_features):
    b, n, dim = x.shape
    scale = dim_key ** -0.5
    dall = 2 * dim_key + dim_value

    block_q = min(n, 128)
    assert n % block_q == 0, "seq_len must be divisible by the q/m tile size"
    block_m = block_q
    num_q = n // block_q
    num_m = n // block_m
    rel_width = _round_up(2 * n, 128)          # lane-dense rel slab width

    # --- one-time parameter prep (fold scale into q weight; per-head layouts) ---
    wq = (params["w_q"] * scale).reshape(dim, heads, dim_key)
    wk = params["w_k"].reshape(dim, heads, dim_key)
    wv = params["w_v"].reshape(dim, heads, dim_value)
    w_qkv = jnp.transpose(jnp.concatenate([wq, wk, wv], axis=-1),
                          (1, 0, 2)).astype(x.dtype)                 # (h, dim, dall)
    w_rel = jnp.transpose(
        params["w_rel_k"].reshape(num_rel_pos_features, heads, dim_key),
        (1, 0, 2)).astype(x.dtype)                                   # (h, F, dk)
    w_out_h = params["w_out"].reshape(heads, dim_value, dim).astype(x.dtype)
    b_out = params["b_out"].reshape(1, dim).astype(x.dtype)
    cb = params["rel_content_bias"].reshape(heads, 1, dim_key).astype(x.dtype)
    pb = params["rel_pos_bias"].reshape(heads, 1, dim_key).astype(x.dtype)

    # --- positional features: (2n-1, F), prepend one zero row & pad to Wp ---
    pos = get_positional_embed(n, num_rel_pos_features).astype(x.dtype)
    pos_pad = jnp.zeros((rel_width, num_rel_pos_features), dtype=x.dtype)
    pos_pad = pos_pad.at[1:2 * n].set(pos)

    # --- rel_k projection, written directly in (heads, Wp, dk) layout ---
    rel_k = pl.pallas_call(
        _rel_k_kernel,
        out_shape=jax.ShapeDtypeStruct((heads, rel_width, dim_key), x.dtype),
        grid=(heads,),
        in_specs=[
            pl.BlockSpec((rel_width, num_rel_pos_features), lambda h: (0, 0)),
            pl.BlockSpec((1, num_rel_pos_features, dim_key), lambda h: (h, 0, 0)),
        ],
        out_specs=pl.BlockSpec((1, rel_width, dim_key), lambda h: (h, 0, 0)),
        compiler_params=pltpu.CompilerParams(dimension_semantics=("parallel",)),
    )(pos_pad, w_rel)

    # --- fused q/k/v projection, outputs already (b, heads, n, d) ---
    qkv_kernel = functools.partial(_qkv_proj_kernel,
                                   dim_key=dim_key, dim_value=dim_value)
    q, k, v = pl.pallas_call(
        qkv_kernel,
        out_shape=(
            jax.ShapeDtypeStruct((b, heads, n, dim_key), x.dtype),
            jax.ShapeDtypeStruct((b, heads, n, dim_key), x.dtype),
            jax.ShapeDtypeStruct((b, heads, n, dim_value), x.dtype),
        ),
        grid=(heads, b, num_m),          # weight block (head-only) stays resident
        in_specs=[
            pl.BlockSpec((1, block_m, dim), lambda hi, bi, mi: (bi, mi, 0)),
            pl.BlockSpec((1, dim, dall), lambda hi, bi, mi: (hi, 0, 0)),
        ],
        out_specs=(
            pl.BlockSpec((1, 1, block_m, dim_key), lambda hi, bi, mi: (bi, hi, mi, 0)),
            pl.BlockSpec((1, 1, block_m, dim_key), lambda hi, bi, mi: (bi, hi, mi, 0)),
            pl.BlockSpec((1, 1, block_m, dim_value), lambda hi, bi, mi: (bi, hi, mi, 0)),
        ),
        compiler_params=pltpu.CompilerParams(
            dimension_semantics=("parallel", "parallel", "parallel")),
    )(x, w_qkv)

    # --- fused attention core, tiled over query blocks ---
    attn_kernel = functools.partial(_attention_kernel, seq_len=n,
                                    rel_width=rel_width, block_q=block_q)
    out_heads = pl.pallas_call(
        attn_kernel,
        out_shape=jax.ShapeDtypeStruct((b, heads, n, dim_value), x.dtype),
        grid=(heads, b, num_q),          # rel_k/cb/pb resident per head; k/v per (b,h)
        in_specs=[
            pl.BlockSpec((1, 1, block_q, dim_key), lambda hi, bi, qi: (bi, hi, qi, 0)),
            pl.BlockSpec((1, 1, n, dim_key), lambda hi, bi, qi: (bi, hi, 0, 0)),
            pl.BlockSpec((1, 1, n, dim_value), lambda hi, bi, qi: (bi, hi, 0, 0)),
            pl.BlockSpec((1, rel_width, dim_key), lambda hi, bi, qi: (hi, 0, 0)),
            pl.BlockSpec((1, 1, dim_key), lambda hi, bi, qi: (hi, 0, 0)),
            pl.BlockSpec((1, 1, dim_key), lambda hi, bi, qi: (hi, 0, 0)),
        ],
        out_specs=pl.BlockSpec((1, 1, block_q, dim_value),
                               lambda hi, bi, qi: (bi, hi, qi, 0)),
        compiler_params=pltpu.CompilerParams(
            dimension_semantics=("parallel", "parallel", "parallel")),
    )(q, k, v, rel_k, cb, pb)

    # --- output projection: contract (heads, dv) with head-accumulation ---
    y = pl.pallas_call(
        _out_proj_kernel,
        out_shape=jax.ShapeDtypeStruct((b, n, dim), x.dtype),
        grid=(b, num_m, heads),
        in_specs=[
            pl.BlockSpec((1, 1, block_m, dim_value), lambda bi, mi, hi: (bi, hi, mi, 0)),
            pl.BlockSpec((1, dim_value, dim), lambda bi, mi, hi: (hi, 0, 0)),
            pl.BlockSpec((1, dim), lambda bi, mi, hi: (0, 0)),
        ],
        out_specs=pl.BlockSpec((1, block_m, dim), lambda bi, mi, hi: (bi, mi, 0)),
        scratch_shapes=[pltpu.VMEM((block_m, dim), jnp.float32)],
        compiler_params=pltpu.CompilerParams(
            dimension_semantics=("parallel", "parallel", "arbitrary")),
    )(out_heads, w_out_h, b_out)
    return y


# ---------------------------------------------------------------------------
# Pure-JAX reference (mirrors the PyTorch module exactly)
# ---------------------------------------------------------------------------
def _relative_shift_ref(x):
    b, h, t1, w = x.shape
    x = jnp.concatenate([jnp.zeros_like(x[..., :1]), x], axis=-1)
    t2 = w + 1
    x = x.reshape(b, h, t2, t1)
    x = x[:, :, 1:, :]
    x = x.reshape(b, h, t1, t2 - 1)
    return x[..., : (t2 + 1) // 2]


def attention_reference(x, params, *, heads, dim_key, dim_value,
                        num_rel_pos_features):
    b, n, dim = x.shape
    scale = dim_key ** -0.5
    q = (x @ params["w_q"]).reshape(b, n, heads, dim_key).transpose(0, 2, 1, 3)
    k = (x @ params["w_k"]).reshape(b, n, heads, dim_key).transpose(0, 2, 1, 3)
    v = (x @ params["w_v"]).reshape(b, n, heads, dim_value).transpose(0, 2, 1, 3)
    q = q * scale
    cb = params["rel_content_bias"].reshape(1, heads, 1, dim_key)
    pb = params["rel_pos_bias"].reshape(1, heads, 1, dim_key)
    content = jnp.einsum("bhid,bhjd->bhij", q + cb, k)
    positions = get_positional_embed(n, num_rel_pos_features).astype(x.dtype)
    rel_k = (positions @ params["w_rel_k"]).reshape(2 * n - 1, heads, dim_key).transpose(1, 0, 2)
    rel_logits = jnp.einsum("bhid,hjd->bhij", q + pb, rel_k)
    rel_logits = _relative_shift_ref(rel_logits)
    attn = jax.nn.softmax(content + rel_logits, axis=-1)
    out = jnp.einsum("bhij,bhjd->bhid", attn, v)
    out = out.transpose(0, 2, 1, 3).reshape(b, n, heads * dim_value)
    return out @ params["w_out"] + params["b_out"]


if __name__ == "__main__":
    key = jax.random.PRNGKey(0)
    batch, seq, dim = 2, 16, 32
    heads, dim_key, dim_value = 2, 16, 16
    num_rel_pos_features = 12   # must be divisible by 6

    keys = jax.random.split(key, 9)

    def init(k, shape, fan_in):
        return jax.random.normal(k, shape, dtype=jnp.float32) / math.sqrt(fan_in)

    params = {
        "w_q": init(keys[0], (dim, heads * dim_key), dim),
        "w_k": init(keys[1], (dim, heads * dim_key), dim),
        "w_v": init(keys[2], (dim, heads * dim_value), dim),
        "w_rel_k": init(keys[3], (num_rel_pos_features, heads * dim_key),
                        num_rel_pos_features),
        "rel_content_bias": jax.random.normal(keys[4], (heads, dim_key), dtype=jnp.float32),
        "rel_pos_bias": jax.random.normal(keys[5], (heads, dim_key), dtype=jnp.float32),
        # NOTE: the PyTorch module zero-initialises to_out (output would be all
        # zeros); random weights are used here so the check is non-trivial —
        # the forward math is identical for any parameter values.
        "w_out": init(keys[6], (heads * dim_value, dim), heads * dim_value),
        "b_out": init(keys[7], (dim,), dim),
    }

    x = jax.random.normal(keys[8], (batch, seq, dim), dtype=jnp.float32)

    out = enformer_attention(
        x, params, heads=heads, dim_key=dim_key, dim_value=dim_value,
        num_rel_pos_features=num_rel_pos_features)
    out = jax.block_until_ready(out)

    with jax.default_matmul_precision("float32"):
        ref = attention_reference(
            x, params, heads=heads, dim_key=dim_key, dim_value=dim_value,
            num_rel_pos_features=num_rel_pos_features)
    ref = jax.block_until_ready(ref)

    assert out.shape == (batch, seq, dim), out.shape
    max_err = float(jnp.max(jnp.abs(out - ref)))
    # Tolerance slightly relaxed vs an exact-divide version because the softmax
    # denominator uses the EUP approximate reciprocal (pl.reciprocal(approx=True));
    # any indexing/shift bug would produce errors orders of magnitude larger.
    assert max_err < 2e-2, f"max abs error vs reference: {max_err}"

    print("KERNEL_OK")
</pallas_src>

<mosaic_0001>
module attributes {stable_mosaic.version = 11 : i64} {
  func.func @_rel_k_kernel(%arg0: i32, %arg1: memref<128x12xf32, #tpu.memory_space<vmem>>, %arg2: memref<1x12x16xf32, #tpu.memory_space<vmem>>, %arg3: memref<1x128x16xf32, #tpu.memory_space<vmem>>) attributes {dimension_semantics = [#tpu.dimension_semantics<parallel>], iteration_bounds = array<i64: 2>, scalar_prefetch = 0 : i64, scratch_operands = 0 : i64, tpu.core_type = #tpu.core_type<tc>, window_params = [{pipeline_mode = #tpu.pipeline_mode<synchronous>, transform_indices = @transform_0, window_bounds = array<i64: 128, 12>}, {transform_indices = @transform_1, window_bounds = array<i64: 1, 12, 16>}, {transform_indices = @transform_2, window_bounds = array<i64: 1, 128, 16>}]} {
    %c0 = arith.constant 0 : index
    %c0_0 = arith.constant 0 : index
    %0 = vector.load %arg1[%c0, %c0_0] : memref<128x12xf32, #tpu.memory_space<vmem>>, vector<128x12xf32>
    %c0_1 = arith.constant 0 : index
    %c0_2 = arith.constant 0 : index
    %c0_3 = arith.constant 0 : index
    %1 = vector.load %arg2[%c0_1, %c0_2, %c0_3] : memref<1x12x16xf32, #tpu.memory_space<vmem>>, vector<1x12x16xf32>
    %2 = vector.shape_cast %1 : vector<1x12x16xf32> to vector<12x16xf32>
    %cst = arith.constant dense<0.000000e+00> : vector<128x16xf32>
    %3 = tpu.matmul %0, %2, %cst {dimension_numbers = #tpu.dot_dimension_numbers<[1], [0], [0], [1], [0, 0, 1, 1], [], []>} : vector<128x12xf32>, vector<12x16xf32>, vector<128x16xf32> -> vector<128x16xf32>
    %c0_4 = arith.constant 0 : index
    %c0_5 = arith.constant 0 : index
    %c0_6 = arith.constant 0 : index
    %4 = vector.load %arg3[%c0_4, %c0_5, %c0_6] : memref<1x128x16xf32, #tpu.memory_space<vmem>>, vector<1x128x16xf32>
    %5 = vector.shape_cast %4 : vector<1x128x16xf32> to vector<128x16xf32>
    %6 = vector.shape_cast %3 : vector<128x16xf32> to vector<1x128x16xf32>
    tpu.vector_store %arg3[%c0_4, %c0_5, %c0_6], %6 {strides = array<i32>} : memref<1x128x16xf32, #tpu.memory_space<vmem>>, vector<1x128x16xf32>,
    return
  }
  func.func @transform_0(%arg0: i32) -> (i32, i32) {
    %c0_i32 = arith.constant 0 : i32
    %c0_i32_0 = arith.constant 0 : i32
    %c0_i32_1 = arith.constant 0 : i32
    return %c0_i32, %c0_i32_0 : i32, i32
  }
  func.func @transform_1(%arg0: i32) -> (i32, i32, i32) {
    %c0_i32 = arith.constant 0 : i32
    %c0_i32_0 = arith.constant 0 : i32
    %c0_i32_1 = arith.constant 0 : i32
    return %arg0, %c0_i32, %c0_i32_0 : i32, i32, i32
  }
  func.func @transform_2(%arg0: i32) -> (i32, i32, i32) {
    %c0_i32 = arith.constant 0 : i32
    %c0_i32_0 = arith.constant 0 : i32
    %c0_i32_1 = arith.constant 0 : i32
    return %arg0, %c0_i32, %c0_i32_0 : i32, i32, i32
  }
}

</mosaic_0001>

<bundles_post_ra>
// kernel: tpu_custom_call.1
= control target key start
LH: loop header
LB: loop body
LE: loop exit
PB: predicated region body
PF: predicated region fallthrough
CT: control target
= control target key end

     0   :  { %s549_s9 = smov 0   ;;  %s668_s0 = inlined_call_operand.vmem [shape: f32[128,12], index: 0, kind: input, shape index: {}]   ;;  %s669_s1 = inlined_call_operand.vmem [shape: f32[2,12,16], index: 1, kind: input, shape index: {}]   ;;  %s670_s2 = inlined_call_operand.vmem [shape: f32[2,128,16], index: 2, kind: output, shape index: {}]  }
   0x1 LB: > { %s432_s10 = sadd.s32 4294967295, %s531_s9   ;;  %p436_p0 = scmp.ge.s32.totalorder %s531_s9, 1  ;;  %s531_s9 = sphi %s549_s9, %s12_s9  }
   0x2   : > { %p112_p1 = scmp.lt.s32.totalorder %s531_s9, 3 }
   0x4   : > { %p113_p2 = pnand %p436_p0, %p112_p1 }
   0x5   : > { %p134_p3 = scmp.lt.s32.totalorder (!%p113_p2), %s432_s10, 1  ;;  %v144_v0 = vld [vmem:[%s668_s0] sm:$0xff] (!%p113_p2)  ;;  %vm162_vm0 = vcmask (!%p113_p2), 97280   ;;  %vm211_vm1 = vcmask (!%p113_p2), 1043456   ;;  %vm533_vm2 = vmmov (!%p113_p2), 1   ;;  %v145_v5 = vld [vmem:[%s668_s0 + $0x8] sm:$0xff] (!%p113_p2) }
   0x6   : > { %116 = sbr.rel (%p113_p2) target bundleno = 249 (0xf9), region = 28  ;;  %v152_v1 = vld [vmem:[%s668_s0 + $0x40] sm:$0xff] (!%p113_p2)  ;;  %484 = vmatprep.mubr.msk.f32.mxu0 (!%p113_p2), %vm162_vm0, %v144_v0  ;;  %vm509_vm3 = vmpackc.low (!%p113_p2), %vm211_vm1, %vm533_vm2  ;;  %v153_v6 = vld [vmem:[%s668_s0 + $0x48] sm:$0xff] (!%p113_p2)  ;;  %vm360_vm4 = vcmask (!%p113_p2), 130048  }
   0x7   : > { %496 = vmatprep.mubr.msk.f32.mxu1 (!%p113_p2), %vm162_vm0, %v152_v1  ;;  %v146_v7 = vld [vmem:[%s668_s0 + $0x10] sm:$0xff] (!%p113_p2)  ;;  %v147_v9 = vld [vmem:[%s668_s0 + $0x18] sm:$0xff] (!%p113_p2)  ;;  %v148_v11 = vld [vmem:[%s668_s0 + $0x20] sm:$0xff] (!%p113_p2) }
   0x8   : > { %v154_v8 = vld [vmem:[%s668_s0 + $0x50] sm:$0xff] (!%p113_p2)  ;;  %v155_v10 = vld [vmem:[%s668_s0 + $0x58] sm:$0xff] (!%p113_p2)  ;;  %v156_v12 = vld [vmem:[%s668_s0 + $0x60] sm:$0xff] (!%p113_p2) }
   0x9   : > { %v149_v13 = vld [vmem:[%s668_s0 + $0x28] sm:$0xff] (!%p113_p2)  ;;  %v150_v15 = vld [vmem:[%s668_s0 + $0x30] sm:$0xff] (!%p113_p2)  ;;  %v151_v17 = vld [vmem:[%s668_s0 + $0x38] sm:$0xff] (!%p113_p2) }
   0xa   : > { %v157_v14 = vld [vmem:[%s668_s0 + $0x68] sm:$0xff] (!%p113_p2)  ;;  %v158_v16 = vld [vmem:[%s668_s0 + $0x70] sm:$0xff] (!%p113_p2)  ;;  %v159_v18 = vld [vmem:[%s668_s0 + $0x78] sm:$0xff] (!%p113_p2) }
   0xd   : > { %s672_s10 = smov (!%p134_p3, %s432_s10), 1 }
   0xe   : > { %s460_s15 = sshll.u32 %s672_s10, 4  ;;  %s461_s21 = sshll.u32 %s672_s10, 7 }
   0xf   : > { %s138_s18 = scalar_lea.vmem %s669_s1, %s460_s15  ;;  %s631_s24 = scalar_lea.vmem %s670_s2, %s461_s21 }
  0x10   : > { %v160_v2 = vld [vmem:[%s138_s18] sm:$0xff]  ;;  %v161_v3 = vld [vmem:[%s138_s18 + $0x8] sm:$0xf] }
  0x11   : > { %v508_v4 = vpack.c.bf16 %v161_v3, %v160_v2 }
  0x13   : > { %510 = vmatprep.subr.msk.bf16.mxu0 %vm509_vm3, %v508_v4  ;;  %514 = vmatprep.subr.msk.bf16.mxu1 %vm509_vm3, %v508_v4 }
  0x14   : > { %513 = vmatpush3.bf16.msk.msra.mxu0 %vm509_vm3, %v508_v4  ;;  %515 = vmatpush3.bf16.msk.msra.mxu1 %vm509_vm3, %v508_v4 }
  0x17   : > { %485 = vmatmul.mubr.msk.f32.vlgmr.msra.gmra.mrb[0].mxu0 %vm162_vm0, %v145_v5  ;;  %497 = vmatmul.mubr.msk.f32.vlgmr.msra.gmra.mrb[0].mxu1 %vm162_vm0, %v153_v6 }
  0x18   : > { %487 = vmatprep.mubr.msk.f32.mxu0 %vm162_vm0, %v146_v7  ;;  %499 = vmatprep.mubr.msk.f32.mxu1 %vm162_vm0, %v154_v8 }
  0x1b   : > { %488 = vmatmul.mubr.msk.f32.gmra.mrb[2].mxu0 %vm162_vm0, %v147_v9  ;;  %500 = vmatmul.mubr.msk.f32.gmra.mrb[2].mxu1 %vm162_vm0, %v155_v10 }
  0x1c   : > { %490 = vmatprep.mubr.msk.f32.mxu0 %vm162_vm0, %v148_v11  ;;  %502 = vmatprep.mubr.msk.f32.mxu1 %vm162_vm0, %v156_v12 }
  0x1f   : > { %491 = vmatmul.mubr.msk.f32.gmra.mrb[4].mxu0 %vm162_vm0, %v149_v13  ;;  %503 = vmatmul.mubr.msk.f32.gmra.mrb[4].mxu1 %vm162_vm0, %v157_v14 }
  0x20   : > { %493 = vmatprep.mubr.msk.f32.mxu0 %vm162_vm0, %v150_v15  ;;  %505 = vmatprep.mubr.msk.f32.mxu1 %vm162_vm0, %v158_v16 }
  0x23   : > { %494 = vmatmul.mubr.msk.f32.gmra.mrb[6].mxu0 %vm162_vm0, %v151_v17  ;;  %506 = vmatmul.mubr.msk.f32.gmra.mrb[6].mxu1 %vm162_vm0, %v159_v18 }
  0xea   : > { %v486_v19 = vpop.f32.mrb[0].mxu0  ;;  %v498_v20 = vpop.f32.mrb[0].mxu1 }
  0xeb   : > { %362 = vst.msk [vmem:[%s631_s24 + $0x8] sm:$0xff] %vm360_vm4, %v486_v19  ;;  %370 = vst.msk [vmem:[%s631_s24 + $0x48] sm:$0xff] %vm360_vm4, %v498_v20  ;;  %v281_v21 = vpop.f32.mrb[1].mxu0  ;;  %v321_v22 = vpop.f32.mrb[1].mxu1 }
  0xec   : > { %361 = vst.msk [vmem:[%s631_s24] sm:$0xff] %vm360_vm4, %v281_v21  ;;  %369 = vst.msk [vmem:[%s631_s24 + $0x40] sm:$0xff] %vm360_vm4, %v321_v22 }
  0xee   : > { %v489_v23 = vpop.f32.mrb[2].mxu0  ;;  %v501_v24 = vpop.f32.mrb[2].mxu1 }
  0xef   : > { %364 = vst.msk [vmem:[%s631_s24 + $0x18] sm:$0xff] %vm360_vm4, %v489_v23  ;;  %372 = vst.msk [vmem:[%s631_s24 + $0x58] sm:$0xff] %vm360_vm4, %v501_v24  ;;  %v291_v25 = vpop.f32.mrb[3].mxu0  ;;  %v331_v26 = vpop.f32.mrb[3].mxu1 }
  0xf0   : > { %363 = vst.msk [vmem:[%s631_s24 + $0x10] sm:$0xff] %vm360_vm4, %v291_v25  ;;  %371 = vst.msk [vmem:[%s631_s24 + $0x50] sm:$0xff] %vm360_vm4, %v331_v26 }
  0xf2   : > { %v492_v27 = vpop.f32.mrb[4].mxu0  ;;  %v504_v28 = vpop.f32.mrb[4].mxu1 }
  0xf3   : > { %366 = vst.msk [vmem:[%s631_s24 + $0x28] sm:$0xff] %vm360_vm4, %v492_v27  ;;  %374 = vst.msk [vmem:[%s631_s24 + $0x68] sm:$0xff] %vm360_vm4, %v504_v28  ;;  %v301_v29 = vpop.f32.mrb[5].mxu0  ;;  %v341_v30 = vpop.f32.mrb[5].mxu1 }
  0xf4   : > { %365 = vst.msk [vmem:[%s631_s24 + $0x20] sm:$0xff] %vm360_vm4, %v301_v29  ;;  %373 = vst.msk [vmem:[%s631_s24 + $0x60] sm:$0xff] %vm360_vm4, %v341_v30 }
  0xf6   : > { %v495_v31 = vpop.f32.mrb[6].mxu0  ;;  %v507_v32 = vpop.f32.mrb[6].mxu1 }
  0xf7   : > { %368 = vst.msk [vmem:[%s631_s24 + $0x38] sm:$0xff] %vm360_vm4, %v495_v31  ;;  %376 = vst.msk [vmem:[%s631_s24 + $0x78] sm:$0xff] %vm360_vm4, %v507_v32  ;;  %v311_v33 = vpop.f32.mrb[7].mxu0  ;;  %v351_v34 = vpop.f32.mrb[7].mxu1 }
  0xf8   : > { %367 = vst.msk [vmem:[%s631_s24 + $0x30] sm:$0xff] %vm360_vm4, %v311_v33  ;;  %375 = vst.msk [vmem:[%s631_s24 + $0x70] sm:$0xff] %vm360_vm4, %v351_v34 }
  0xf9 PF: > { %s12_s9 = sadd.s32 1, %s531_s9  }
  0xfa   : > { %p9_p4 = scmp.ge.s32.totalorder %s12_s9, 4  }
  0xfc   :  { %11 = sbr.rel (!%p9_p4) target bundleno = 1 (0x1), region = 58 }

</bundles_post_ra>
